<compile_context>
chip_gen: v7x
topology: tpu7x:2x2x1
jax: 0.10.0
libtpu: 0.0.40
codegen_flags: <defaults>
</compile_context>

<pallas_src>
import functools

import jax
import jax.numpy as jnp
from jax.experimental import pallas as pl
from jax.experimental.pallas import tpu as pltpu

LANE = 128          # lane width: output channels are padded to this (lane-dense stores)
_SLACK = 8          # zeroed slack rows at the end of the stitched input scratch


def _round_up(x, m):
    return (x + m - 1) // m * m


def _chan_pad(c):
    # Small channel counts only padded to the sublane width (avoid 32x HBM inflation).
    return _round_up(c, 8) if c < LANE else _round_up(c, LANE)


def _pick_rb(ho):
    # image rows per grid step (must be even for the halo BlockSpec indexing)
    if ho >= 32:
        return 8
    if ho >= 8:
        return 4
    return 2


# ----------------------------- Pallas kernel ----------------------------------

def _raster_conv_kernel(*refs, taps, planes, rb, w2, cout_p,
                        row_lo, row_hi, col_lo, col_hi, relu, has_residual):
    """Generic 'raster conv': out[p] = mask(p) * act(sum_t In[p + off_t] @ W_t + b (+ res[p])).

    x_main : (1, planes, rb*w2, cin_p)  bf16   rb-image-row window of each input plane
    x_halo : (1, planes, 2*w2,  cin_p)  bf16   2-image-row halo below the main window
    w_ref  : (T, cin_p, cout_p)         bf16   per-tap weights, BN scale pre-folded
    b_ref  : (1, cout_p)                f32    folded BN bias
    r_ref  : (1, rb, w2, cout_p)        bf16   optional residual (conv2 only)
    o_ref  : (1, rb, w2, cout_p)        bf16
    xs_ref : (planes*(rb+2)*w2 + 8, cin_p) bf16 VMEM scratch (stitched main+halo windows)
    """
    if has_residual:
        x_main, x_halo, w_ref, b_ref, r_ref, o_ref, xs_ref = refs
    else:
        x_main, x_halo, w_ref, b_ref, o_ref, xs_ref = refs
        r_ref = None

    j = pl.program_id(1)
    rows = rb * w2
    span = (rb + 2) * w2
    cin_p = x_main.shape[-1]

    # Stitch the contiguous (rb + 2)-image-row window of every plane into the scratch.
    for p in range(planes):
        xs_ref[pl.ds(p * span, rows), :] = x_main[0, p]
        xs_ref[pl.ds(p * span + rows, 2 * w2), :] = x_halo[0, p]
    xs_ref[pl.ds(planes * span, _SLACK), :] = jnp.zeros((_SLACK, cin_p), xs_ref.dtype)

    # KxK conv as len(taps) shifted matmuls; bf16 MXU operands, f32 accumulation.
    acc = jnp.zeros((rows, cout_p), jnp.float32)
    for t, (pln, ry, rx) in enumerate(taps):
        off = pln * span + ry * w2 + rx
        acc = acc + jnp.dot(xs_ref[pl.ds(off, rows), :], w_ref[t],
                            preferred_element_type=jnp.float32)

    acc = acc.reshape(rb, w2, cout_p) + b_ref[...]          # folded BN bias (once per tile)
    if has_residual:
        acc = acc + r_ref[0].astype(jnp.float32)
    if relu:
        acc = jnp.maximum(acc, 0.0)

    # Zero everything outside the valid output window so this buffer can be consumed
    # directly as the next conv's zero-bordered padded-input raster.
    row_idx = j * rb + jax.lax.broadcasted_iota(jnp.int32, (rb, w2, 1), 0)
    col_idx = jax.lax.broadcasted_iota(jnp.int32, (rb, w2, 1), 1)
    valid = ((row_idx >= row_lo) & (row_idx < row_hi) &
             (col_idx >= col_lo) & (col_idx < col_hi))
    o_ref[0] = jnp.where(valid, acc, 0.0).astype(o_ref.dtype)


def _raster_conv(x_raster, w_taps, bias, *, taps, rb, w2, out_rows_pad,
                 valid_rows, valid_cols, relu, residual=None):
    """x_raster: (n, planes, hin*w2, cin_p) bf16 padded input raster(s).
    Returns (n, out_rows_pad, w2, cout_p) bf16 with zeros outside the valid window."""
    n, planes, _, cin_p = x_raster.shape
    taps_n, _, cout_p = w_taps.shape
    assert taps_n == len(taps) and out_rows_pad % rb == 0
    num_rb = out_rows_pad // rb
    rows = rb * w2

    in_specs = [
        pl.BlockSpec((1, planes, rows, cin_p), lambda b, j: (b, 0, j, 0)),
        pl.BlockSpec((1, planes, 2 * w2, cin_p),
                     lambda b, j: (b, 0, (j + 1) * (rb // 2), 0)),
        pl.BlockSpec((taps_n, cin_p, cout_p), lambda b, j: (0, 0, 0)),
        pl.BlockSpec((1, cout_p), lambda b, j: (0, 0)),
    ]
    args = [x_raster, x_raster, w_taps, bias]
    if residual is not None:
        in_specs.append(pl.BlockSpec((1, rb, w2, cout_p), lambda b, j: (b, j, 0, 0)))
        args.append(residual)

    kernel = functools.partial(
        _raster_conv_kernel, taps=tuple(taps), planes=planes, rb=rb, w2=w2,
        cout_p=cout_p, row_lo=valid_rows[0], row_hi=valid_rows[1],
        col_lo=valid_cols[0], col_hi=valid_cols[1], relu=relu,
        has_residual=residual is not None)

    scratch_rows = planes * (rb + 2) * w2 + _SLACK

    # VMEM budget derived from the actual block sizes (v7x has only 64 MiB physical).
    blk_in = planes * (rows + 2 * w2) * cin_p * 2
    blk_out = rows * cout_p * 2
    blk_res = rows * cout_p * 2 if residual is not None else 0
    fixed = (taps_n * cin_p * cout_p * 2 + cout_p * 4 +
             scratch_rows * cin_p * 2 + rows * cout_p * 4)
    vmem_limit = int(min(max(4 * (2 * (blk_in + blk_out + blk_res) + fixed),
                             32 * 2**20), 64 * 2**20))

    return pl.pallas_call(
        kernel,
        grid=(n, num_rb),
        in_specs=in_specs,
        out_specs=pl.BlockSpec((1, rb, w2, cout_p), lambda b, j: (b, j, 0, 0)),
        out_shape=jax.ShapeDtypeStruct((n, out_rows_pad, w2, cout_p), jnp.bfloat16),
        scratch_shapes=[pltpu.VMEM((scratch_rows, cin_p), jnp.bfloat16)],
        compiler_params=pltpu.CompilerParams(
            dimension_semantics=("parallel", "parallel"),
            vmem_limit_bytes=vmem_limit),
    )(*args)


# ----------------------------- JAX-side glue ----------------------------------

def _fold_conv_bn(w_oihw, gamma, beta, mean, var, cin_p, cout_p, eps=1e-5):
    """Fold BN into the conv: ((K*K, cin_p, cout_p) bf16, (1, cout_p) f32)."""
    scale = gamma / jnp.sqrt(var + eps)
    bias = beta - mean * scale
    cout, cin, kh, kw = w_oihw.shape
    w_scaled = w_oihw * scale[:, None, None, None]
    w_taps = jnp.transpose(w_scaled, (2, 3, 1, 0)).reshape(kh * kw, cin, cout)
    w_taps = jnp.pad(w_taps, ((0, 0), (0, cin_p - cin), (0, cout_p - cout)))
    bias_p = jnp.pad(bias, (0, cout_p - cout)).reshape(1, cout_p)
    return w_taps.astype(jnp.bfloat16), bias_p.astype(jnp.float32)


def residual_block(x_nchw, params, stride):
    """Pallas implementation of ResidualBlock.forward. Input/output are NCHW f32."""
    x = jnp.transpose(x_nchw, (0, 2, 3, 1)).astype(jnp.float32)    # NHWC
    n, h, w, cin = x.shape
    cout = params["w1"].shape[0]
    cin_p = _chan_pad(cin)
    cout_p = _round_up(cout, LANE)

    ho = -(-h // stride)
    wo = -(-w // stride)
    rb = _pick_rb(ho)
    w2 = _round_up(wo + 3, 8)                  # shared raster width (multiple of 8)
    hp2 = _round_up(ho, rb)                    # conv2 / residual padded output rows
    hp1 = hp2 + rb                             # conv1 output rows (= conv2 padded input rows)
    hin1 = hp1 + rb                            # conv1 input image rows per plane

    # ---- conv1 + bn1 + relu, written directly into conv2's padded-input raster ------
    w1, b1 = _fold_conv_bn(params["w1"], params["bn1_g"], params["bn1_b"],
                           params["bn1_m"], params["bn1_v"], cin_p, cout_p)
    if stride == 1:
        xin = jnp.pad(x, ((0, 0), (2, hin1 - 2 - h), (2, w2 - 2 - w), (0, cin_p - cin)))
        x_raster = xin.reshape(n, 1, hin1 * w2, cin_p).astype(jnp.bfloat16)
        taps1 = [(0, dy, dx) for dy in range(3) for dx in range(3)]
    else:
        # polyphase decomposition of the strided 3x3 conv: no dense-then-subsample.
        xin = jnp.pad(x, ((0, 0), (3, 2 * hin1 - 3 - h), (3, 2 * w2 - 3 - w),
                          (0, cin_p - cin)))
        phases = jnp.stack([xin[:, a::2, b::2, :]
                            for a in range(2) for b in range(2)], axis=1)
        x_raster = phases.reshape(n, 4, hin1 * w2, cin_p).astype(jnp.bfloat16)
        taps1 = [(2 * (dy % 2) + (dx % 2), dy // 2, dx // 2)
                 for dy in range(3) for dx in range(3)]
    # valid data lands at row/col offset 1; borders are zeroed in-kernel.
    y1 = _raster_conv(x_raster, w1, b1, taps=taps1, rb=rb, w2=w2,
                      out_rows_pad=hp1, valid_rows=(1, ho + 1),
                      valid_cols=(1, wo + 1), relu=True)
    y1_raster = y1.reshape(n, 1, hp1 * w2, cout_p)       # free reshape (merge dims)

    # ---- identity / downsample residual, already in conv2's output layout -----------
    if stride != 1 or cin != cout:
        wd, bd = _fold_conv_bn(params["wd"], params["bnd_g"], params["bnd_b"],
                               params["bnd_m"], params["bnd_v"], cin_p, cout_p)
        xd = x[:, ::stride, ::stride, :]                 # 1x1/stride conv samples only these
        hin_d = hp2 + rb
        xd_p = jnp.pad(xd, ((0, 0), (0, hin_d - ho), (0, w2 - wo), (0, cin_p - cin)))
        xd_raster = xd_p.reshape(n, 1, hin_d * w2, cin_p).astype(jnp.bfloat16)
        identity = _raster_conv(xd_raster, wd, bd, taps=[(0, 0, 0)], rb=rb, w2=w2,
                                out_rows_pad=hp2, valid_rows=(0, ho),
                                valid_cols=(0, wo), relu=False)
    else:
        identity = jnp.pad(x, ((0, 0), (0, hp2 - h), (0, w2 - w),
                               (0, cout_p - cin))).astype(jnp.bfloat16)

    # ---- conv2 + bn2 + residual add + relu, all fused in one kernel -----------------
    w2k, b2 = _fold_conv_bn(params["w2"], params["bn2_g"], params["bn2_b"],
                            params["bn2_m"], params["bn2_v"], cout_p, cout_p)
    taps2 = [(0, dy, dx) for dy in range(3) for dx in range(3)]
    out = _raster_conv(y1_raster, w2k, b2, taps=taps2, rb=rb, w2=w2,
                       out_rows_pad=hp2, valid_rows=(0, ho),
                       valid_cols=(0, wo), relu=True, residual=identity)

    out = out[:, :ho, :wo, :cout].astype(jnp.float32)
    return jnp.transpose(out, (0, 3, 1, 2))              # back to NCHW


# ----------------------------- Reference (pure JAX) ----------------------------

def _ref_conv(x, w, stride, pad):
    return jax.lax.conv_general_dilated(
        x, w, (stride, stride), [(pad, pad), (pad, pad)],
        dimension_numbers=("NCHW", "OIHW", "NCHW"),
        precision=jax.lax.Precision.HIGHEST)


def _ref_bn(x, g, b, m, v, eps=1e-5):
    s = g / jnp.sqrt(v + eps)
    bb = b - m * s
    return x * s[None, :, None, None] + bb[None, :, None, None]


def residual_block_ref(x, params, stride):
    cin = x.shape[1]
    cout = params["w1"].shape[0]
    out = jnp.maximum(
        _ref_bn(_ref_conv(x, params["w1"], stride, 1),
                params["bn1_g"], params["bn1_b"], params["bn1_m"], params["bn1_v"]), 0.0)
    out = _ref_bn(_ref_conv(out, params["w2"], 1, 1),
                  params["bn2_g"], params["bn2_b"], params["bn2_m"], params["bn2_v"])
    if stride != 1 or cin != cout:
        identity = _ref_bn(_ref_conv(x, params["wd"], stride, 0),
                           params["bnd_g"], params["bnd_b"], params["bnd_m"], params["bnd_v"])
    else:
        identity = x
    return jnp.maximum(out + identity, 0.0)


# ----------------------------- Parameter init ---------------------------------

def make_params(key, cin, cout, stride):
    ks = jax.random.split(key, 16)

    def bn_params(k0, k1, k2, k3, c):
        return (1.0 + 0.1 * jax.random.normal(k0, (c,), jnp.float32),
                0.1 * jax.random.normal(k1, (c,), jnp.float32),
                0.1 * jax.random.normal(k2, (c,), jnp.float32),
                jax.random.uniform(k3, (c,), jnp.float32, 0.5, 1.5))

    params = {}
    params["w1"] = 0.1 * jax.random.normal(ks[0], (cout, cin, 3, 3), jnp.float32)
    params["w2"] = 0.1 * jax.random.normal(ks[1], (cout, cout, 3, 3), jnp.float32)
    params["bn1_g"], params["bn1_b"], params["bn1_m"], params["bn1_v"] = bn_params(
        ks[2], ks[3], ks[4], ks[5], cout)
    params["bn2_g"], params["bn2_b"], params["bn2_m"], params["bn2_v"] = bn_params(
        ks[6], ks[7], ks[8], ks[9], cout)
    if stride != 1 or cin != cout:
        params["wd"] = 0.1 * jax.random.normal(ks[10], (cout, cin, 1, 1), jnp.float32)
        params["bnd_g"], params["bnd_b"], params["bnd_m"], params["bnd_v"] = bn_params(
            ks[11], ks[12], ks[13], ks[14], cout)
    return params


# ----------------------------- Main --------------------------------------------

if __name__ == "__main__":
    key = jax.random.PRNGKey(0)
    kx1, kx2, kp1, kp2 = jax.random.split(key, 4)

    # bf16 MXU matmuls vs. f32-HIGHEST reference -> loosened tolerances.
    TOL = dict(atol=5e-2, rtol=5e-2)

    # Case 1: identity shortcut (stride=1, in==out channels).
    x1 = jax.random.normal(kx1, (2, 4, 16, 16), jnp.float32)   # NCHW
    p1 = make_params(kp1, cin=4, cout=4, stride=1)
    out1 = jax.block_until_ready(residual_block(x1, p1, stride=1))
    ref1 = jax.block_until_ready(residual_block_ref(x1, p1, stride=1))
    assert out1.shape == (2, 4, 16, 16)
    assert jnp.allclose(out1, ref1, **TOL), "identity-path mismatch"

    # Case 2: downsample shortcut (stride=2, channel change 4 -> 8).
    x2 = jax.random.normal(kx2, (2, 4, 16, 16), jnp.float32)   # NCHW
    p2 = make_params(kp2, cin=4, cout=8, stride=2)
    out2 = jax.block_until_ready(residual_block(x2, p2, stride=2))
    ref2 = jax.block_until_ready(residual_block_ref(x2, p2, stride=2))
    assert out2.shape == (2, 8, 8, 8)
    assert jnp.allclose(out2, ref2, **TOL), "downsample-path mismatch"

    print("KERNEL_OK")
</pallas_src>

<mosaic_0001>
module attributes {stable_mosaic.version = 11 : i64} {
  func.func @_raster_conv_kernel(%arg0: i32, %arg1: i32, %arg2: memref<1x1x96x8xbf16, #tpu.memory_space<vmem>>, %arg3: memref<1x1x48x8xbf16, #tpu.memory_space<vmem>>, %arg4: memref<9x8x128xbf16, #tpu.memory_space<vmem>>, %arg5: memref<1x128xf32, #tpu.memory_space<vmem>>, %arg6: memref<1x4x24x128xbf16, #tpu.memory_space<vmem>>, %arg7: memref<152x8xbf16, #tpu.memory_space<vmem>>) attributes {dimension_semantics = [#tpu.dimension_semantics<parallel>, #tpu.dimension_semantics<parallel>], iteration_bounds = array<i64: 2, 5>, scalar_prefetch = 0 : i64, scratch_operands = 1 : i64, tpu.core_type = #tpu.core_type<tc>, window_params = [{transform_indices = @transform_0, window_bounds = array<i64: 1, 1, 96, 8>}, {transform_indices = @transform_1, window_bounds = array<i64: 1, 1, 48, 8>}, {pipeline_mode = #tpu.pipeline_mode<synchronous>, transform_indices = @transform_2, window_bounds = array<i64: 9, 8, 128>}, {pipeline_mode = #tpu.pipeline_mode<synchronous>, transform_indices = @transform_3, window_bounds = array<i64: 1, 128>}, {transform_indices = @transform_4, window_bounds = array<i64: 1, 4, 24, 128>}]} {
    %c0 = arith.constant 0 : index
    %c0_0 = arith.constant 0 : index
    %c0_1 = arith.constant 0 : index
    %c0_2 = arith.constant 0 : index
    %0 = vector.load %arg2[%c0, %c0_0, %c0_1, %c0_2] : memref<1x1x96x8xbf16, #tpu.memory_space<vmem>>, vector<1x1x96x8xbf16>
    %1 = vector.shape_cast %0 : vector<1x1x96x8xbf16> to vector<96x8xbf16>
    %c0_3 = arith.constant 0 : index
    %c0_4 = arith.constant 0 : index
    %2 = vector.load %arg7[%c0_3, %c0_4] : memref<152x8xbf16, #tpu.memory_space<vmem>>, vector<96x8xbf16>
    tpu.vector_store %arg7[%c0_3, %c0_4], %1 {strides = array<i32>} : memref<152x8xbf16, #tpu.memory_space<vmem>>, vector<96x8xbf16>,
    %c0_5 = arith.constant 0 : index
    %c0_6 = arith.constant 0 : index
    %c0_7 = arith.constant 0 : index
    %c0_8 = arith.constant 0 : index
    %3 = vector.load %arg3[%c0_5, %c0_6, %c0_7, %c0_8] : memref<1x1x48x8xbf16, #tpu.memory_space<vmem>>, vector<1x1x48x8xbf16>
    %4 = vector.shape_cast %3 : vector<1x1x48x8xbf16> to vector<48x8xbf16>
    %c96 = arith.constant 96 : index
    %c0_9 = arith.constant 0 : index
    %5 = vector.load %arg7[%c96, %c0_9] : memref<152x8xbf16, #tpu.memory_space<vmem>>, vector<48x8xbf16>
    tpu.vector_store %arg7[%c96, %c0_9], %4 {strides = array<i32>} : memref<152x8xbf16, #tpu.memory_space<vmem>>, vector<48x8xbf16>,
    %cst = arith.constant 0.000000e+00 : bf16
    %6 = vector.broadcast %cst : bf16 to vector<8x8xbf16>
    %c144 = arith.constant 144 : index
    %c0_10 = arith.constant 0 : index
    %7 = vector.load %arg7[%c144, %c0_10] : memref<152x8xbf16, #tpu.memory_space<vmem>>, vector<8x8xbf16>
    tpu.vector_store %arg7[%c144, %c0_10], %6 {strides = array<i32>} : memref<152x8xbf16, #tpu.memory_space<vmem>>, vector<8x8xbf16>,
    %cst_11 = arith.constant 0.000000e+00 : f32
    %8 = vector.broadcast %cst_11 : f32 to vector<96x128xf32>
    %c0_12 = arith.constant 0 : index
    %c0_13 = arith.constant 0 : index
    %9 = vector.load %arg7[%c0_12, %c0_13] : memref<152x8xbf16, #tpu.memory_space<vmem>>, vector<96x8xbf16>
    %c0_14 = arith.constant 0 : index
    %c0_15 = arith.constant 0 : index
    %c0_16 = arith.constant 0 : index
    %10 = vector.load %arg4[%c0_14, %c0_15, %c0_16] : memref<9x8x128xbf16, #tpu.memory_space<vmem>>, vector<1x8x128xbf16>
    %11 = vector.shape_cast %10 : vector<1x8x128xbf16> to vector<8x128xbf16>
    %cst_17 = arith.constant dense<0.000000e+00> : vector<96x128xf32>
    %12 = tpu.matmul %9, %11, %cst_17 {dimension_numbers = #tpu.dot_dimension_numbers<[1], [0], [0], [1], [0, 0, 1, 1], [], []>} : vector<96x8xbf16>, vector<8x128xbf16>, vector<96x128xf32> -> vector<96x128xf32>
    %13 = arith.addf %8, %12 : vector<96x128xf32>
    %c1 = arith.constant 1 : index
    %c0_18 = arith.constant 0 : index
    %14 = vector.load %arg7[%c1, %c0_18] : memref<152x8xbf16, #tpu.memory_space<vmem>>, vector<96x8xbf16>
    %c1_19 = arith.constant 1 : index
    %c0_20 = arith.constant 0 : index
    %c0_21 = arith.constant 0 : index
    %15 = vector.load %arg4[%c1_19, %c0_20, %c0_21] : memref<9x8x128xbf16, #tpu.memory_space<vmem>>, vector<1x8x128xbf16>
    %16 = vector.shape_cast %15 : vector<1x8x128xbf16> to vector<8x128xbf16>
    %cst_22 = arith.constant dense<0.000000e+00> : vector<96x128xf32>
    %17 = tpu.matmul %14, %16, %cst_22 {dimension_numbers = #tpu.dot_dimension_numbers<[1], [0], [0], [1], [0, 0, 1, 1], [], []>} : vector<96x8xbf16>, vector<8x128xbf16>, vector<96x128xf32> -> vector<96x128xf32>
    %18 = arith.addf %13, %17 : vector<96x128xf32>
    %c2 = arith.constant 2 : index
    %c0_23 = arith.constant 0 : index
    %19 = vector.load %arg7[%c2, %c0_23] : memref<152x8xbf16, #tpu.memory_space<vmem>>, vector<96x8xbf16>
    %c2_24 = arith.constant 2 : index
    %c0_25 = arith.constant 0 : index
    %c0_26 = arith.constant 0 : index
    %20 = vector.load %arg4[%c2_24, %c0_25, %c0_26] : memref<9x8x128xbf16, #tpu.memory_space<vmem>>, vector<1x8x128xbf16>
    %21 = vector.shape_cast %20 : vector<1x8x128xbf16> to vector<8x128xbf16>
    %cst_27 = arith.constant dense<0.000000e+00> : vector<96x128xf32>
    %22 = tpu.matmul %19, %21, %cst_27 {dimension_numbers = #tpu.dot_dimension_numbers<[1], [0], [0], [1], [0, 0, 1, 1], [], []>} : vector<96x8xbf16>, vector<8x128xbf16>, vector<96x128xf32> -> vector<96x128xf32>
    %23 = arith.addf %18, %22 : vector<96x128xf32>
    %c24 = arith.constant 24 : index
    %c0_28 = arith.constant 0 : index
    %24 = vector.load %arg7[%c24, %c0_28] : memref<152x8xbf16, #tpu.memory_space<vmem>>, vector<96x8xbf16>
    %c3 = arith.constant 3 : index
    %c0_29 = arith.constant 0 : index
    %c0_30 = arith.constant 0 : index
    %25 = vector.load %arg4[%c3, %c0_29, %c0_30] : memref<9x8x128xbf16, #tpu.memory_space<vmem>>, vector<1x8x128xbf16>
    %26 = vector.shape_cast %25 : vector<1x8x128xbf16> to vector<8x128xbf16>
    %cst_31 = arith.constant dense<0.000000e+00> : vector<96x128xf32>
    %27 = tpu.matmul %24, %26, %cst_31 {dimension_numbers = #tpu.dot_dimension_numbers<[1], [0], [0], [1], [0, 0, 1, 1], [], []>} : vector<96x8xbf16>, vector<8x128xbf16>, vector<96x128xf32> -> vector<96x128xf32>
    %28 = arith.addf %23, %27 : vector<96x128xf32>
    %c25 = arith.constant 25 : index
    %c0_32 = arith.constant 0 : index
    %29 = vector.load %arg7[%c25, %c0_32] : memref<152x8xbf16, #tpu.memory_space<vmem>>, vector<96x8xbf16>
    %c4 = arith.constant 4 : index
    %c0_33 = arith.constant 0 : index
    %c0_34 = arith.constant 0 : index
    %30 = vector.load %arg4[%c4, %c0_33, %c0_34] : memref<9x8x128xbf16, #tpu.memory_space<vmem>>, vector<1x8x128xbf16>
    %31 = vector.shape_cast %30 : vector<1x8x128xbf16> to vector<8x128xbf16>
    %cst_35 = arith.constant dense<0.000000e+00> : vector<96x128xf32>
    %32 = tpu.matmul %29, %31, %cst_35 {dimension_numbers = #tpu.dot_dimension_numbers<[1], [0], [0], [1], [0, 0, 1, 1], [], []>} : vector<96x8xbf16>, vector<8x128xbf16>, vector<96x128xf32> -> vector<96x128xf32>
    %33 = arith.addf %28, %32 : vector<96x128xf32>
    %c26 = arith.constant 26 : index
    %c0_36 = arith.constant 0 : index
    %34 = vector.load %arg7[%c26, %c0_36] : memref<152x8xbf16, #tpu.memory_space<vmem>>, vector<96x8xbf16>
    %c5 = arith.constant 5 : index
    %c0_37 = arith.constant 0 : index
    %c0_38 = arith.constant 0 : index
    %35 = vector.load %arg4[%c5, %c0_37, %c0_38] : memref<9x8x128xbf16, #tpu.memory_space<vmem>>, vector<1x8x128xbf16>
    %36 = vector.shape_cast %35 : vector<1x8x128xbf16> to vector<8x128xbf16>
    %cst_39 = arith.constant dense<0.000000e+00> : vector<96x128xf32>
    %37 = tpu.matmul %34, %36, %cst_39 {dimension_numbers = #tpu.dot_dimension_numbers<[1], [0], [0], [1], [0, 0, 1, 1], [], []>} : vector<96x8xbf16>, vector<8x128xbf16>, vector<96x128xf32> -> vector<96x128xf32>
    %38 = arith.addf %33, %37 : vector<96x128xf32>
    %c48 = arith.constant 48 : index
    %c0_40 = arith.constant 0 : index
    %39 = vector.load %arg7[%c48, %c0_40] : memref<152x8xbf16, #tpu.memory_space<vmem>>, vector<96x8xbf16>
    %c6 = arith.constant 6 : index
    %c0_41 = arith.constant 0 : index
    %c0_42 = arith.constant 0 : index
    %40 = vector.load %arg4[%c6, %c0_41, %c0_42] : memref<9x8x128xbf16, #tpu.memory_space<vmem>>, vector<1x8x128xbf16>
    %41 = vector.shape_cast %40 : vector<1x8x128xbf16> to vector<8x128xbf16>
    %cst_43 = arith.constant dense<0.000000e+00> : vector<96x128xf32>
    %42 = tpu.matmul %39, %41, %cst_43 {dimension_numbers = #tpu.dot_dimension_numbers<[1], [0], [0], [1], [0, 0, 1, 1], [], []>} : vector<96x8xbf16>, vector<8x128xbf16>, vector<96x128xf32> -> vector<96x128xf32>
    %43 = arith.addf %38, %42 : vector<96x128xf32>
    %c49 = arith.constant 49 : index
    %c0_44 = arith.constant 0 : index
    %44 = vector.load %arg7[%c49, %c0_44] : memref<152x8xbf16, #tpu.memory_space<vmem>>, vector<96x8xbf16>
    %c7 = arith.constant 7 : index
    %c0_45 = arith.constant 0 : index
    %c0_46 = arith.constant 0 : index
    %45 = vector.load %arg4[%c7, %c0_45, %c0_46] : memref<9x8x128xbf16, #tpu.memory_space<vmem>>, vector<1x8x128xbf16>
    %46 = vector.shape_cast %45 : vector<1x8x128xbf16> to vector<8x128xbf16>
    %cst_47 = arith.constant dense<0.000000e+00> : vector<96x128xf32>
    %47 = tpu.matmul %44, %46, %cst_47 {dimension_numbers = #tpu.dot_dimension_numbers<[1], [0], [0], [1], [0, 0, 1, 1], [], []>} : vector<96x8xbf16>, vector<8x128xbf16>, vector<96x128xf32> -> vector<96x128xf32>
    %48 = arith.addf %43, %47 : vector<96x128xf32>
    %c50 = arith.constant 50 : index
    %c0_48 = arith.constant 0 : index
    %49 = vector.load %arg7[%c50, %c0_48] : memref<152x8xbf16, #tpu.memory_space<vmem>>, vector<96x8xbf16>
    %c8 = arith.constant 8 : index
    %c0_49 = arith.constant 0 : index
    %c0_50 = arith.constant 0 : index
    %50 = vector.load %arg4[%c8, %c0_49, %c0_50] : memref<9x8x128xbf16, #tpu.memory_space<vmem>>, vector<1x8x128xbf16>
    %51 = vector.shape_cast %50 : vector<1x8x128xbf16> to vector<8x128xbf16>
    %cst_51 = arith.constant dense<0.000000e+00> : vector<96x128xf32>
    %52 = tpu.matmul %49, %51, %cst_51 {dimension_numbers = #tpu.dot_dimension_numbers<[1], [0], [0], [1], [0, 0, 1, 1], [], []>} : vector<96x8xbf16>, vector<8x128xbf16>, vector<96x128xf32> -> vector<96x128xf32>
    %53 = arith.addf %48, %52 : vector<96x128xf32>
    %54 = vector.shape_cast %53 : vector<96x128xf32> to vector<4x24x128xf32>
    %c0_52 = arith.constant 0 : index
    %c0_53 = arith.constant 0 : index
    %55 = vector.load %arg5[%c0_52, %c0_53] : memref<1x128xf32, #tpu.memory_space<vmem>>, vector<1x128xf32>
    %56 = vector.shape_cast %55 : vector<1x128xf32> to vector<1x1x128xf32>
    %57 = vector.broadcast %56 : vector<1x1x128xf32> to vector<4x24x128xf32>
    %58 = arith.addf %54, %57 : vector<4x24x128xf32>
    %cst_54 = arith.constant 0.000000e+00 : f32
    %59 = vector.broadcast %cst_54 : f32 to vector<4x24x128xf32>
    %60 = arith.maximumf %58, %59 : vector<4x24x128xf32>
    %c4_i32 = arith.constant 4 : i32
    %61 = arith.muli %arg1, %c4_i32 : i32
    %62 = tpu.iota {dimensions = array<i32: 0>} : vector<4x24x1xi32>
    %63 = vector.broadcast %61 : i32 to vector<4x24x1xi32>
    %64 = arith.addi %63, %62 : vector<4x24x1xi32>
    %65 = tpu.iota {dimensions = array<i32: 1>} : vector<4x24x1xi32>
    %c1_i32 = arith.constant 1 : i32
    %66 = vector.broadcast %c1_i32 : i32 to vector<4x24x1xi32>
    %67 = arith.cmpi sge, %64, %66 : vector<4x24x1xi32>
    %c17_i32 = arith.constant 17 : i32
    %68 = vector.broadcast %c17_i32 : i32 to vector<4x24x1xi32>
    %69 = arith.cmpi slt, %64, %68 : vector<4x24x1xi32>
    %70 = arith.andi %67, %69 : vector<4x24x1xi1>
    %c1_i32_55 = arith.constant 1 : i32
    %71 = vector.broadcast %c1_i32_55 : i32 to vector<4x24x1xi32>
    %72 = arith.cmpi sge, %65, %71 : vector<4x24x1xi32>
    %73 = arith.andi %70, %72 : vector<4x24x1xi1>
    %c17_i32_56 = arith.constant 17 : i32
    %74 = vector.broadcast %c17_i32_56 : i32 to vector<4x24x1xi32>
    %75 = arith.cmpi slt, %65, %74 : vector<4x24x1xi32>
    %76 = arith.andi %73, %75 : vector<4x24x1xi1>
    %cst_57 = arith.constant 0.000000e+00 : f32
    %77 = vector.shape_cast %76 : vector<4x24x1xi1> to vector<4x24x1xi1>
    %78 = vector.broadcast %77 : vector<4x24x1xi1> to vector<4x24x128xi1>
    %79 = vector.broadcast %cst_57 : f32 to vector<4x24x128xf32>
    %80 = arith.select %78, %60, %79 : vector<4x24x128xi1>, vector<4x24x128xf32>
    %81 = arith.truncf %80 : vector<4x24x128xf32> to vector<4x24x128xbf16>
    %c0_58 = arith.constant 0 : index
    %c0_59 = arith.constant 0 : index
    %c0_60 = arith.constant 0 : index
    %c0_61 = arith.constant 0 : index
    %82 = vector.load %arg6[%c0_58, %c0_59, %c0_60, %c0_61] : memref<1x4x24x128xbf16, #tpu.memory_space<vmem>>, vector<1x4x24x128xbf16>
    %83 = vector.shape_cast %82 : vector<1x4x24x128xbf16> to vector<4x24x128xbf16>
    %84 = vector.shape_cast %81 : vector<4x24x128xbf16> to vector<1x4x24x128xbf16>
    tpu.vector_store %arg6[%c0_58, %c0_59, %c0_60, %c0_61], %84 {strides = array<i32>} : memref<1x4x24x128xbf16, #tpu.memory_space<vmem>>, vector<1x4x24x128xbf16>,
    return
  }
  func.func @transform_0(%arg0: i32, %arg1: i32) -> (i32, i32, i32, i32) {
    %c0_i32 = arith.constant 0 : i32
    %c0_i32_0 = arith.constant 0 : i32
    %c0_i32_1 = arith.constant 0 : i32
    return %arg0, %c0_i32, %arg1, %c0_i32_0 : i32, i32, i32, i32
  }
  func.func @transform_1(%arg0: i32, %arg1: i32) -> (i32, i32, i32, i32) {
    %c1_i32 = arith.constant 1 : i32
    %0 = arith.addi %arg1, %c1_i32 : i32
    %c2_i32 = arith.constant 2 : i32
    %1 = arith.muli %0, %c2_i32 : i32
    %c0_i32 = arith.constant 0 : i32
    %c0_i32_0 = arith.constant 0 : i32
    %c0_i32_1 = arith.constant 0 : i32
    return %arg0, %c0_i32, %1, %c0_i32_0 : i32, i32, i32, i32
  }
  func.func @transform_2(%arg0: i32, %arg1: i32) -> (i32, i32, i32) {
    %c0_i32 = arith.constant 0 : i32
    %c0_i32_0 = arith.constant 0 : i32
    %c0_i32_1 = arith.constant 0 : i32
    %c0_i32_2 = arith.constant 0 : i32
    return %c0_i32, %c0_i32_0, %c0_i32_1 : i32, i32, i32
  }
  func.func @transform_3(%arg0: i32, %arg1: i32) -> (i32, i32) {
    %c0_i32 = arith.constant 0 : i32
    %c0_i32_0 = arith.constant 0 : i32
    %c0_i32_1 = arith.constant 0 : i32
    return %c0_i32, %c0_i32_0 : i32, i32
  }
  func.func @transform_4(%arg0: i32, %arg1: i32) -> (i32, i32, i32, i32) {
    %c0_i32 = arith.constant 0 : i32
    %c0_i32_0 = arith.constant 0 : i32
    %c0_i32_1 = arith.constant 0 : i32
    return %arg0, %arg1, %c0_i32, %c0_i32_0 : i32, i32, i32, i32
  }
}

</mosaic_0001>

<bundles_post_ra>
// kernel: tpu_custom_call.1
= control target key start
LH: loop header
LB: loop body
LE: loop exit
PB: predicated region body
PF: predicated region fallthrough
CT: control target
= control target key end

     0   :  { %9 = vsyncpa [#allocation4], 0  ;;  %s3312_s0 = inlined_call_operand.vmem [shape: bf16[2,1,576,8], index: 0, kind: input, shape index: {}]   ;;  %s3313_s1 = inlined_call_operand.vmem [shape: bf16[2,1,576,8], index: 1, kind: input, shape index: {}]   ;;  %s3314_s2 = inlined_call_operand.vmem [shape: bf16[9,8,128], index: 2, kind: input, shape index: {}]   ;;  %s3315_s3 = inlined_call_operand.vmem [shape: f32[1,128], index: 3, kind: input, shape index: {}]   ;;  %s3316_s4 = inlined_call_operand.hbm [shape: bf16[2,20,24,128], index: 4, kind: output, shape index: {}]  }
   0x1   :  { %11 = vsyncpa [#allocation4 + $0x1], 0  ;;  %s2775_s15 = smov 0   ;;  %s2777_s16 = smov 0  }
   0x2   :  { %s2779_s17 = smov 0   ;;  %s2781_s18 = smov 0  }
   0x3   :  { %s2783_s19 = smov 0   ;;  %s2785_s20 = smov 0  }
   0x4   :  { %s2787_s21 = smov 0   ;;  %s2789_s22 = smov 0  }
   0x5 LB: > { %s2061_s23 = sadd.s32 4294967295, %s2744_s22   ;;  %s2062_s24 = sadd.s32 4294967294, %s2744_s22   ;;  %s2744_s22 = sphi %s2789_s22, %s17_s22   ;;  %s2740_s21 = sphi %s2787_s21, %s3333_s21   ;;  %s2736_s20 = sphi %s2785_s20, %s3332_s20   ;;  %s2732_s19 = sphi %s2783_s19, %s3331_s19   ;;  %s2728_s18 = sphi %s2781_s18, %s3330_s18   ;;  %s2724_s17 = sphi %s2779_s17, %s3329_s17   ;;  %s2720_s16 = sphi %s2777_s16, %s3328_s16   ;;  %s2716_s15 = sphi %s2775_s15, %s3327_s15  }
   0x6   : > { %s26_s25 = sadd.s32 1, %s2736_s20  ;;  %s29_s26 = sadd.s32 1, %s2740_s21 }
   0x7   : > { %p27_p0 = scmp.ge.s32.totalorder %s26_s25, 5  ;;  %p150_p1 = scmp.ne.s32.totalorder %s2724_s17, %s2720_s16 }
   0x8   : > { %p151_p2 = scmp.eq.s32.totalorder %s2061_s23, 9  ;;  %p156_p5 = scmp.ne.s32.totalorder %s2720_s16, %s2716_s15 }
   0x9   : > { %s3335_s25 = smov (%p27_p0, %s26_s25), 0  ;;  %s3337_s26 = smov (!%p27_p0, %s29_s26), %s2740_s21 }
   0xa   : > { %s136_s27 = ssub.s32 %s2736_s20, %s3335_s25  ;;  %p2826_p3 = por %p151_p2, %p150_p1 }
   0xb   : > { %p31_p4 = scmp.ge.s32.totalorder %s3337_s26, 2  ;;  %p157_p6 = scmp.eq.s32.totalorder %s2062_s24, 9 }
   0xc   : > { %p2067_p7 = scmp.ge.s32.totalorder %s2744_s22, 1  ;;  %p211_p9 = scmp.lt.s32.totalorder %s2744_s22, 11 }
   0xd   : > { %s3339_s26 = smov (%p31_p4, %s3337_s26), 0  ;;  %p2835_p8 = por %p157_p6, %p156_p5 }
   0xe   : > { %s135_s30 = ssub.s32 %s2740_s21, %s3339_s26  ;;  %s140_s5 = sadd.s32 1, %s2724_s17 }
   0xf   : > { %s137_s6 = sor.u32 %s136_s27, %s135_s30  ;;  %p212_p10 = pnand %p2067_p7, %p211_p9 }
  0x10   : > { %p138_p11 = scmp.eq.s32.totalorder %s137_s6, 0  ;;  %v2072_v0 = vld [vmem:[%s3314_s2 + $0x4] sm:$0xf] (!%p212_p10)  ;;  %vm437_vm0 = vcmask (!%p212_p10), 1043456   ;;  %v2852_v1 = vld [vmem:[%s3314_s2 + $0x10] sm:$0xf] (!%p212_p10) }
  0x11   : > { %215 = sbr.rel (%p212_p10) target bundleno = 393 (0x189), region = 36  ;;  %2529 = vmatprep.subr.msk.bf16.mxu1 (!%p212_p10), %vm437_vm0, %v2072_v0  ;;  %v439_v2 = vsel (!%p212_p10), %vm437_vm0, %v2072_v0, 0  ;;  %2533 = vmatprep.subr.msk.bf16.mxu0 (!%p212_p10), %vm437_vm0, %v2852_v1  ;;  %v2863_v3 = vsel (!%p212_p10), %vm437_vm0, %v2852_v1, 0  ;;  %p253_p12 = scmp.lt.s32.totalorder (!%p212_p10), %s2732_s19, 1  ;;  %v328_v4 = vld [vmem:[%s3314_s2] sm:$0xf] (!%p212_p10) }
  0x12   : > { %s2844_s7 = scalar_select %p138_p11, %s2724_s17, %s140_s5  }
  0x13   : > { %s2855_s12 = smul.u32 (!%p212_p10), 12, %s2728_s18  ;;  %2306 = vmatpush3.bf16.msra.mxu1 (!%p212_p10), %v439_v2  ;;  %2362 = vmatpush3.bf16.msra.mxu0 (!%p212_p10), %v2863_v3  ;;  %v2127_v5 = vld [vmem:[%s3314_s2 + $0x14] sm:$0xf] (!%p212_p10)  ;;  %s262_s6 = sadd.s32 (!%p212_p10), 1, %s2728_s18  ;;  %vm290_vm1 = vcmask (!%p212_p10), 60416   ;;  %v2746_v6 = vmov (!%p212_p10), 0  }
  0x14   : > { %2530 = vmatprep.subr.msk.bf16.mxu1 (!%p212_p10), %vm437_vm0, %v328_v4  ;;  %2535 = vmatprep.subr.msk.bf16.mxu0 (!%p212_p10), %vm437_vm0, %v2127_v5  ;;  %s2882_s8 = smul.u32 (!%p212_p10), 12, %s262_s6  ;;  %315 = vst.msk [vmem:[#allocation2 + $0x48] sm:$0xf] (!%p212_p10), %vm290_vm1, %v2746_v6  ;;  %vm365_vm2 = vsmask.f32 (!%p212_p10), 7424  ;;  %vm418_vm3 = vcmask (!%p212_p10), 64512  }
  0x15   : > { %p255_p13 = scmp.lt.s32.totalorder (!%p212_p10), %s2855_s12, 71  ;;  %v535_v19 = vsel (!%p212_p10), %vm437_vm0, %v328_v4, 0  ;;  %v2912_v20 = vsel (!%p212_p10), %vm437_vm0, %v2127_v5, 0  ;;  %vm624_vm4 = vcmask (!%p212_p10), 1046528   ;;  %v2949_v51 = vld [vmem:[%s3314_s2 + $0x8] sm:$0xf] (!%p212_p10) }
  0x16   : > { %p267_p0 = scmp.lt.s32.totalorder (!%p212_p10), %s2882_s8, 71  ;;  %v2135_v4 = vld [vmem:[%s3314_s2 + $0x18] sm:$0xf] (!%p212_p10) }
  0x18   : > { %s2875_s27 = scalar_select %p253_p12, %s2732_s19, 1 }
  0x19   : > { %s256_s30 = scalar_select %p255_p13, %s2855_s12, 71 }
  0x1a   : > { %s2540_s5 = smul.u32 72, %s2875_s27  ;;  %s3341_s8 = smov (!%p267_p0, %s2882_s8), 71 }
  0x1c   : > { %s258_s9 = sadd.s32 %s2540_s5, %s256_s30  ;;  %s2908_s23 = sadd.s32 %s2540_s5, %s3341_s8 }
  0x1d   : > { %s2068_s10 = sshll.u32 %s258_s9, 2  ;;  %s2071_s24 = sshll.u32 %s2908_s23, 2 }
  0x1e   : > { %s260_s14 = scalar_lea.vmem %s3312_s0, %s2068_s10  ;;  %s2944_s5 = scalar_lea.vmem %s3313_s1, %s2071_s24 }
  0x1f   : > { %v278_v7 = vld [vmem:[%s260_s14] sm:$0xf]  ;;  %v279_v8 = vld [vmem:[%s260_s14 + $0x4] sm:$0xf]  ;;  %v280_v9 = vld [vmem:[%s260_s14 + $0x8] sm:$0xf] }
  0x20   : > { %v281_v10 = vld [vmem:[%s260_s14 + $0xc] sm:$0xf]  ;;  %291 = vst.msk [vmem:[#allocation2] sm:$0xf] %vm290_vm1, %v278_v7  ;;  %292 = vst.msk [vmem:[#allocation2 + $0x4] sm:$0xf] %vm290_vm1, %v279_v8 }
  0x21   : > { %293 = vst.msk [vmem:[#allocation2 + $0x8] sm:$0xf] %vm290_vm1, %v280_v9  ;;  %v282_v11 = vld [vmem:[%s260_s14 + $0x10] sm:$0xf]  ;;  %v283_v12 = vld [vmem:[%s260_s14 + $0x14] sm:$0xf] }
  0x22   : > { %294 = vst.msk [vmem:[#allocation2 + $0xc] sm:$0xf] %vm290_vm1, %v281_v10  ;;  %v284_v13 = vld [vmem:[%s260_s14 + $0x18] sm:$0xf]  ;;  %295 = vst.msk [vmem:[#allocation2 + $0x10] sm:$0xf] %vm290_vm1, %v282_v11 }
  0x23   : > { %296 = vst.msk [vmem:[#allocation2 + $0x14] sm:$0xf] %vm290_vm1, %v283_v12  ;;  %v285_v14 = vld [vmem:[%s260_s14 + $0x1c] sm:$0xf]  ;;  %v286_v15 = vld [vmem:[%s260_s14 + $0x20] sm:$0xf] }
  0x24   : > { %297 = vst.msk [vmem:[#allocation2 + $0x18] sm:$0xf] %vm290_vm1, %v284_v13  ;;  %298 = vst.msk [vmem:[#allocation2 + $0x1c] sm:$0xf] %vm290_vm1, %v285_v14  ;;  %v287_v16 = vld [vmem:[%s260_s14 + $0x24] sm:$0xf] }
  0x25   : > { %299 = vst.msk [vmem:[#allocation2 + $0x20] sm:$0xf] %vm290_vm1, %v286_v15  ;;  %v288_v17 = vld [vmem:[%s260_s14 + $0x28] sm:$0xf]  ;;  %v289_v18 = vld [vmem:[%s260_s14 + $0x2c] sm:$0xf] }
  0x26   : > { %300 = vst.msk [vmem:[#allocation2 + $0x24] sm:$0xf] %vm290_vm1, %v287_v16  ;;  %301 = vst.msk [vmem:[#allocation2 + $0x28] sm:$0xf] %vm290_vm1, %v288_v17  ;;  %v303_v5 = vld [vmem:[%s2944_s5] sm:$0xf] }
  0x27   : > { %302 = vst.msk [vmem:[#allocation2 + $0x2c] sm:$0xf] %vm290_vm1, %v289_v18  ;;  %v316_v21 = vld [vmem:[#allocation2] sm:$0xf]  ;;  %v2914_v22 = vld [vmem:[#allocation2 + $0x4] sm:$0xf] }
  0x28   : > { %v2917_v23 = vcombine.low %v316_v21, %v2914_v22  ;;  %309 = vst.msk [vmem:[#allocation2 + $0x30] sm:$0xf] %vm290_vm1, %v303_v5  ;;  %v304_v14 = vld [vmem:[%s2944_s5 + $0x4] sm:$0xf]  ;;  %v305_v16 = vld [vmem:[%s2944_s5 + $0x8] sm:$0xf] }
  0x29   : > { %v2919_v24 = vld [vmem:[#allocation2 + $0x8] sm:$0xff]   ;;  %v911_v26 = vld [vmem:[#allocation2 + $0x10] sm:$0xf]  ;;  %310 = vst.msk [vmem:[#allocation2 + $0x34] sm:$0xf] %vm290_vm1, %v304_v14  ;;  %s2171_s30 = sshll.u32 %s2728_s18, 2 }
  0x2a   : > { %v910_v25 = vld [vmem:[#allocation2 + $0xc] sm:$0xf]  ;;  %v367_v27 = vshrl.u32 %v2917_v23, 16  ;;  %v369_v28 = vshll.u32 %v2917_v23, 16  ;;  %v374_v29 = vshll.u32 %v2919_v24, 16  ;;  %v378_v30 = vshrl.u32 %v2919_v24, 16 }
  0x2b   : > { %v2926_v31 = vld [vmem:[#allocation2 + $0x14] sm:$0xff]   ;;  %v2114_v33 = vcombine.low %v910_v25, %v911_v26  ;;  %v1124_v56 = vld [vmem:[#allocation2 + $0xc] sm:$0xe]  ;;  %311 = vst.msk [vmem:[#allocation2 + $0x38] sm:$0xf] %vm290_vm1, %v305_v16  ;;  %s249_s18 = sand.u32 1, %s2720_s16  }
  0x2c   : > { %v2928_v32 = vld [vmem:[#allocation2 + $0x10] sm:$0xff]   ;;  %v371_v34 = vrot.slane %v369_v28, 1  ;;  %v376_v35 = vrot.slane %v374_v29, 1  ;;  %v966_v36 = vshll.u32 %v2926_v31, 16  ;;  %v970_v37 = vshrl.u32 %v2926_v31, 16  ;;  %v2933_v41 = vld [vmem:[#allocation2 + $0x1c] sm:$0xff]  }
  0x2d   : > { %v959_v38 = vshrl.u32 %v2114_v33, 16  ;;  %v961_v39 = vshll.u32 %v2114_v33, 16  ;;  %v382_v40 = vshll.u32 %v2928_v32, 16  ;;  %v2935_v45 = vld [vmem:[#allocation2 + $0x18] sm:$0xff]   ;;  %v386_v46 = vshrl.u32 %v2928_v32, 16  ;;  %v2938_v47 = vld [vmem:[#allocation2 + $0x20] sm:$0xff]  }
  0x2e   : > { %v372_v42 = vor.u32 %v371_v34, %v367_v27  ;;  %v380_v43 = vor.u32 %v378_v30, %v376_v35  ;;  %v968_v44 = vrot.slane %v966_v36, 1  ;;  %v974_v50 = vshll.u32 %v2933_v41, 16  ;;  %v2958_v61 = vld [vmem:[#allocation2 + $0x28] sm:$0xff]   ;;  %v308_v28 = vld [vmem:[%s2944_s5 + $0x14] sm:$0xf]  ;;  %s2539_s8 = smul.u32 48, %s249_s18 }
  0x2f   : > { %v963_v48 = vrot.slane %v961_v39, 1  ;;  %v384_v49 = vrot.slane %v382_v40, 1  ;;  %v390_v54 = vshll.u32 %v2935_v45, 16  ;;  %v394_v55 = vshrl.u32 %v2935_v45, 16  ;;  %v2627_v27 = vld [vmem:[#allocation2 + $0x24] sm:$0xff]   ;;  %s2542_s10 = smul.u32 60, %s2732_s19 }
  0x30   : > { %v377_v52 = vsel %vm365_vm2, %v372_v42, %v376_v35  ;;  %v972_v53 = vor.u32 %v970_v37, %v968_v44  ;;  %v2956_v59 = vrot.slane %v974_v50, 1  ;;  %v398_v63 = vshll.u32 %v2938_v47, 16  ;;  %v2996_v30 = vld [vmem:[#allocation2 + $0x30] ss:$0 sps:$4 sm:$0x11]   ;;  %s3195_s9 = scalar_lea.vmem [#allocation3], %s2539_s8 }
  0x31   : > { %2307 = vmatprep.mubr.msk.bf16.mxu1 %vm418_vm3, %v377_v52  ;;  %v964_v57 = vor.u32 %v963_v48, %v959_v38  ;;  %v385_v58 = vsel %vm365_vm2, %v380_v43, %v384_v49  ;;  %v388_v60 = vor.u32 %v386_v46, %v384_v49  ;;  %v392_v62 = vrot.slane %v390_v54, 1  ;;  %314 = vst.msk [vmem:[#allocation2 + $0x44] sm:$0xf] %vm290_vm1, %v308_v28  ;;  %v2628_v37 = vld [vmem:[#allocation2 + $0x2c] sm:$0xff]   ;;  %v2148_v43 = vld [vmem:[%s3314_s2 + $0x1c] sm:$0xf]  ;;  %s1958_s19 = sadd.s32 %s2542_s10, %s2855_s12 }
  0x32   : > { %2308 = vmatmul.mubr.msk.bf16.vlgmr.msra.gmra.mrb[0].mxu1 %vm418_vm3, %v385_v58  ;;  %v2128_v0 = vcombine.low %v1124_v56, %v911_v26  ;;  %v1131_v2 = vrot.slane %v2926_v31, 1  ;;  %v977_v7 = vsel %vm365_vm2, %v972_v53, %v2956_v59  ;;  %v402_v8 = vshrl.u32 %v2938_v47, 16  ;;  %v2629_v39 = vld [vmem:[#allocation2 + $0x34] sm:$0xff]   ;;  %v2100_v53 = vld [vmem:[%s3314_s2 + $0xc] sm:$0xf]  ;;  %s1961_s11 = sshll.u32 %s3195_s9, 4  ;;  %s3249_s11 = int_to_ptr.vmem [resolvable:$true] %s1961_s11 }
  0x33   : > { %v969_v6 = vsel %vm365_vm2, %v964_v57, %v968_v44  ;;  %2320 = vmatpush3.bf16.msra.mxu1 %v535_v19  ;;  %v406_v9 = vshll.u32 %v2958_v61, 16  ;;  %v393_v10 = vsel %vm365_vm2, %v388_v60, %v392_v62  ;;  %v396_v11 = vor.u32 %v394_v55, %v392_v62  ;;  %v306_v19 = vld [vmem:[%s2944_s5 + $0xc] sm:$0xf]  ;;  %v618_v54 = vld [vmem:[#allocation2] sm:$0xe]  ;;  %v2631_v55 = vld [vmem:[#allocation2 + $0x18] sm:$0xff]  }
  0x34   : > { %2363 = vmatprep.mubr.msk.bf16.mxu0 %vm418_vm3, %v969_v6  ;;  %v400_v12 = vrot.slane %v398_v63, 1  ;;  %v1130_v13 = vrot.slane %v2128_v0, 1  ;;  %2531 = vmatprep.subr.msk.bf16.mxu1 %vm437_vm0, %v2949_v51  ;;  %312 = vst.msk [vmem:[#allocation2 + $0x3c] sm:$0xf] %vm290_vm1, %v306_v19  ;;  %v410_v26 = vshrl.u32 %v2958_v61, 16  ;;  %v1133_v29 = vrot.slane %v2933_v41, 1 }
  0x35   : > { %2364 = vmatmul.mubr.msk.bf16.vlgmr.msra.gmra.mrb[0].mxu0 %vm418_vm3, %v977_v7  ;;  %2311 = vmatprep.mubr.msk.bf16.mxu1 %vm418_vm3, %v393_v10  ;;  %v408_v15 = vrot.slane %v406_v9, 1  ;;  %v414_v33 = vshll.u32 %v2996_v30, 16  ;;  %v1135_v34 = vrot.slane %v2627_v27, 1  ;;  %v1320_v38 = vsel %vm437_vm0, %v2135_v4, 0  ;;  %v1415_v9 = vld [vmem:[#allocation2 + $0x18] sm:$0xf] }
  0x36   : > { %2376 = vmatpush3.bf16.msra.mxu0 %v2912_v20  ;;  %v1132_v17 = vsel %vm624_vm4, %v1130_v13, %v1131_v2  ;;  %v404_v18 = vor.u32 %v402_v8, %v400_v12  ;;  %v401_v21 = vsel %vm365_vm2, %v396_v11, %v400_v12  ;;  %v307_v20 = vld [vmem:[%s2944_s5 + $0x10] sm:$0xf]  ;;  %v1134_v35 = vsel %vm624_vm4, %v1131_v2, %v1133_v29  ;;  %v3043_v10 = vld [vmem:[#allocation2 + $0x1c] sm:$0xf]  ;;  %v2632_v12 = vld [vmem:[#allocation2 + $0x20] sm:$0xff]   ;;  %s2186_s12 = sshll.u32 %s1958_s19, 6 }
  0x37   : > { %2377 = vmatprep.mubr.msk.bf16.mxu0 %vm418_vm3, %v1132_v17  ;;  %2536 = vmatprep.subr.msk.bf16.mxu0 %vm437_vm0, %v2135_v4  ;;  %313 = vst.msk [vmem:[#allocation2 + $0x40] sm:$0xf] %vm290_vm1, %v307_v20  ;;  %v412_v31 = vor.u32 %v410_v26, %v408_v15  ;;  %v416_v36 = vrot.slane %v414_v33, 1  ;;  %v1136_v42 = vsel %vm624_vm4, %v1133_v29, %v1135_v34  ;;  %v1137_v44 = vrot.slane %v2628_v37, 1  ;;  %v2633_v17 = vld [vmem:[#allocation2 + $0x28] sm:$0xff]   ;;  %v3066_v20 = vld [vmem:[#allocation2 + $0x20] sm:$0xff]   ;;  %s3254_s23 = scalar_lea.hbm %s3316_s4, %s2186_s12 }
  0x38   : > { %v409_v25 = vsel %vm365_vm2, %v404_v18, %v408_v15  ;;  %v1139_v46 = vrot.slane %v2629_v39, 1  ;;  %v657_v52 = vsel %vm437_vm0, %v2949_v51, 0  ;;  %v978_v56 = vshrl.u32 %v2933_v41, 16  ;;  %v2162_v26 = vld [vmem:[%s3314_s2 + $0x20] sm:$0xf]  ;;  %s3260_s24 = scalar_lea.sflag [#allocation4], %s249_s18 }
  0x39   : > { %v417_v40 = vsel %vm365_vm2, %v412_v31, %v416_v36  ;;  %v1138_v48 = vsel %vm624_vm4, %v1135_v34, %v1137_v44  ;;  %v982_v57 = vshll.u32 %v2627_v27, 16  ;;  %v2093_v58 = vcombine.low %v618_v54, %v2914_v22  ;;  %v2634_v31 = vld [vmem:[#allocation2 + $0x30] sm:$0xff]   ;;  %s2650_s27 = scalar_lea.vmem %s3249_s11, 768 }
  0x3a   : > { %2312 = vmatmul.mubr.msk.bf16.gmra.mrb[4].mxu1 %vm418_vm3, %v401_v21  ;;  %v1140_v50 = vsel %vm624_vm4, %v1137_v44, %v1139_v46  ;;  %v986_v60 = vshrl.u32 %v2627_v27, 16  ;;  %v980_v62 = vor.u32 %v978_v56, %v2956_v59  ;;  %v990_v0 = vshll.u32 %v2628_v37, 16  ;;  %v3082_v44 = vld [vmem:[#allocation2 + $0x30] sm:$0xff]   ;;  %p2651_p1 = scmp.ne.s32.totalorder %s3249_s11, %s2650_s27 }
  0x3b   : > { %2315 = vmatprep.mubr.msk.bf16.mxu1 %vm418_vm3, %v409_v25  ;;  %v2630_v49 = vld [vmem:[#allocation2 + $0x3c] ss:$0 sps:$4 sm:$0x11]   ;;  %v984_v63 = vrot.slane %v982_v57, 1  ;;  %v626_v2 = vrot.slane %v2919_v24, 1  ;;  %v994_v4 = vshrl.u32 %v2628_v37, 16  ;;  %v2149_v18 = vcombine.low %v1415_v9, %v3043_v10 }
  0x3c   : > { %v998_v5 = vshll.u32 %v2629_v39, 16  ;;  %v1002_v41 = vshrl.u32 %v2629_v39, 16  ;;  %v992_v59 = vrot.slane %v990_v0, 1  ;;  %v1006_v7 = vshll.u32 %v2630_v49, 16  ;;  %v2635_v33 = vld [vmem:[#allocation2 + $0x38] sm:$0xff]   ;;  %p2652_p2 = pnand %p2651_p1, %p2826_p3 }
  0x3d   : > { %v3041_v22 = vsel %vm365_vm2, %v980_v62, %v984_v63  ;;  %v988_v6 = vor.u32 %v986_v60, %v984_v63  ;;  %v625_v8 = vrot.slane %v2093_v58, 1  ;;  %v1534_v16 = vsel %vm437_vm0, %v2148_v43, 0  ;;  %v1629_v9 = vld [vmem:[#allocation2 + $0x18] sm:$0xe] }
  0x3e   : > { %v1000_v11 = vrot.slane %v998_v5, 1  ;;  %v996_v13 = vor.u32 %v994_v4, %v992_v59  ;;  %v1008_v14 = vrot.slane %v1006_v7, 1  ;;  %v628_v27 = vrot.slane %v2928_v32, 1  ;;  %p2653_p4 = pneg %p2652_p2 }
  0x3f   : > { %v627_v21 = vsel %vm624_vm4, %v625_v8, %v626_v2  ;;  %v1466_v28 = vshll.u32 %v2149_v18, 16  ;;  %v630_v29 = vrot.slane %v2935_v45, 1  ;;  %v1471_v37 = vshll.u32 %v3066_v20, 16 }
  0x40   : > { %v1004_v15 = vor.u32 %v1002_v41, %v1000_v11  ;;  %v3051_v19 = vsel %vm365_vm2, %v996_v13, %v1000_v11  ;;  %v629_v34 = vsel %vm624_vm4, %v626_v2, %v628_v27  ;;  %v1491_v62 = vshrl.u32 %v3082_v44, 16  ;;  %v2642_v2 = vld [vmem:[#allocation2 + $0xc] sm:$0xff]  }
  0x41   : > { %2378 = vmatmul.mubr.msk.bf16.vlgmr.msra.gmra.mrb[0].mxu0 %vm418_vm3, %v1134_v35  ;;  %v1464_v35 = vshrl.u32 %v2149_v18, 16  ;;  %v1468_v36 = vrot.slane %v1466_v28, 1  ;;  %v631_v39 = vsel %vm624_vm4, %v628_v27, %v630_v29  ;;  %v1667_v0 = vsel %vm437_vm0, %v2162_v26, 0 }
  0x42   : > { %2316 = vmatmul.mubr.msk.bf16.gmra.mrb[8].mxu1 %vm418_vm3, %v417_v40  ;;  %2390 = vmatpush3.bf16.msra.mxu0 %v1320_v38  ;;  %v3055_v25 = vsel %vm365_vm2, %v1004_v15, %v1008_v14  ;;  %v815_v38 = vsel %vm437_vm0, %v2100_v53, 0  ;;  %v1636_v27 = vrot.slane %v3066_v20, 1 }
  0x43   : > { %2381 = vmatprep.mubr.msk.bf16.mxu0 %vm418_vm3, %v1136_v42  ;;  %2321 = vmatprep.mubr.msk.bf16.mxu1 %vm418_vm3, %v2917_v23  ;;  %v1141_v23 = vrot.slane %v2630_v49, 1  ;;  %v1469_v40 = vor.u32 %v1468_v36, %v1464_v35  ;;  %v1473_v42 = vrot.slane %v1471_v37, 1 }
  0x44   : > { %2537 = vmatprep.subr.msk.bf16.mxu0 %vm437_vm0, %v2148_v43  ;;  %v634_v43 = vrot.slane %v2958_v61, 1 }
  0x45   : > { %v1142_v51 = vsel %vm624_vm4, %v1139_v46, %v1141_v23  ;;  %v2636_v46 = vld [vmem:[#allocation2 + $0x40] sm:$0xff]   ;;  %v3094_v23 = vld [vmem:[#allocation2 + $0x38] sm:$0xff]  }
  0x46   : > { %v1495_v58 = vshll.u32 %v3094_v23, 16  ;;  %v1499_v4 = vshrl.u32 %v3094_v23, 16  ;;  %v1642_v36 = vrot.slane %v3094_v23, 1 }
  0x48   : > { %v1497_v41 = vrot.slane %v1495_v58, 1 }
  0x49   : > { %2382 = vmatmul.mubr.msk.bf16.gmra.mrb[4].mxu0 %vm418_vm3, %v1138_v48  ;;  %v1475_v48 = vshrl.u32 %v3066_v20, 16 }
  0x4a   : > { %2322 = vmatmul.mubr.msk.bf16.vlgmr.msra.gmra.mrb[0].mxu1 %vm418_vm3, %v2919_v24  ;;  %2385 = vmatprep.mubr.msk.bf16.mxu0 %vm418_vm3, %v1140_v50  ;;  %v3046_v24 = vsel %vm365_vm2, %v988_v6, %v992_v59  ;;  %v2645_v59 = vld [vmem:[#allocation2 + $0x48] ss:$0 sps:$4 sm:$0x11]   ;;  %v1501_v7 = vor.u32 %v1499_v4, %v1497_v41 }
  0x4b   : > { %2334 = vmatpush3.bf16.msra.mxu1 %v657_v52  ;;  %2325 = vmatprep.mubr.msk.bf16.mxu1 %vm418_vm3, %v2928_v32  ;;  %v3077_v32 = vld [vmem:[#allocation2 + $0x28] sm:$0xff]   ;;  %v1474_v52 = vsel %vm365_vm2, %v1469_v40, %v1473_v42  ;;  %v1511_v14 = vshll.u32 %v2645_v59, 16 }
  0x4c   : > { %2532 = vmatprep.subr.msk.bf16.mxu1 %vm437_vm0, %v2100_v53  ;;  %v1479_v49 = vshll.u32 %v3077_v32, 16  ;;  %v1483_v53 = vshrl.u32 %v3077_v32, 16 }
  0x4e   : > { %v1481_v54 = vrot.slane %v1479_v49, 1 }
  0x50   : > { %v1485_v56 = vor.u32 %v1483_v53, %v1481_v54 }
  0x51   : > { %2386 = vmatmul.mubr.msk.bf16.gmra.mrb[8].mxu0 %vm418_vm3, %v1142_v51  ;;  %v636_v51 = vrot.slane %v2996_v30, 1 }
  0x52   : > { %2326 = vmatmul.mubr.msk.bf16.gmra.mrb[4].mxu1 %vm418_vm3, %v2935_v45  ;;  %2391 = vmatprep.mubr.msk.bf16.mxu0 %vm418_vm3, %v2631_v55  ;;  %v632_v45 = vrot.slane %v2938_v47, 1  ;;  %v3100_v55 = vld [vmem:[#allocation2 + $0x40] sm:$0xff]  }
  0x53   : > { %2329 = vmatprep.mubr.msk.bf16.mxu1 %vm418_vm3, %v2938_v47  ;;  %v637_v63 = vsel %vm624_vm4, %v634_v43, %v636_v51  ;;  %v1503_v5 = vshll.u32 %v3100_v55, 16  ;;  %v1507_v13 = vshrl.u32 %v3100_v55, 16  ;;  %v1644_v37 = vrot.slane %v3100_v55, 1 }
  0x54   : > { %v633_v50 = vsel %vm624_vm4, %v630_v29, %v632_v45  ;;  %v635_v47 = vsel %vm624_vm4, %v632_v45, %v634_v43  ;;  %v2647_v29 = vld [vmem:[#allocation2 + $0x24] sm:$0xff]  }
  0x55   : > { %v1505_v8 = vrot.slane %v1503_v5, 1 }
  0x57   : > { %v1506_v15 = vsel %vm365_vm2, %v1501_v7, %v1505_v8  ;;  %v1509_v18 = vor.u32 %v1507_v13, %v1505_v8 }
  0x59   : > { %2392 = vmatmul.mubr.msk.bf16.vlgmr.msra.gmra.mrb[0].mxu0 %vm418_vm3, %v2632_v12  ;;  %v2643_v12 = vld [vmem:[#allocation2 + $0x14] sm:$0xff]  }
  0x5a   : > { %2330 = vmatmul.mubr.msk.bf16.gmra.mrb[8].mxu1 %vm418_vm3, %v2958_v61  ;;  %2404 = vmatpush3.bf16.msra.mxu0 %v1534_v16  ;;  %v1487_v61 = vshll.u32 %v3082_v44, 16  ;;  %v2646_v16 = vld [vmem:[#allocation2 + $0x1c] sm:$0xff]  }
  0x5b   : > { %2395 = vmatprep.mubr.msk.bf16.mxu0 %vm418_vm3, %v2633_v17  ;;  %2335 = vmatprep.mubr.msk.bf16.mxu1 %vm418_vm3, %v627_v21  ;;  %v2163_v17 = vcombine.low %v1629_v9, %v3043_v10  ;;  %v1513_v21 = vrot.slane %v1511_v14, 1 }
  0x5c   : > { %2538 = vmatprep.subr.msk.bf16.mxu0 %vm437_vm0, %v2162_v26  ;;  %v1489_v57 = vrot.slane %v1487_v61, 1 }
  0x5d   : > { %v1635_v26 = vrot.slane %v2163_v17, 1  ;;  %v1514_v28 = vsel %vm365_vm2, %v1509_v18, %v1513_v21 }
  0x5e   : > { %v1490_v30 = vsel %vm365_vm2, %v1485_v56, %v1489_v57  ;;  %v1493_v6 = vor.u32 %v1491_v62, %v1489_v57 }
  0x5f   : > { %v1637_v10 = vsel %vm624_vm4, %v1635_v26, %v1636_v27 }
  0x60   : > { %v1498_v11 = vsel %vm365_vm2, %v1493_v6, %v1497_v41 }
  0x61   : > { %2396 = vmatmul.mubr.msk.bf16.gmra.mrb[4].mxu0 %vm418_vm3, %v2634_v31  ;;  %v2648_v31 = vld [vmem:[#allocation2 + $0x2c] sm:$0xff]  }
  0x62   : > { %2336 = vmatmul.mubr.msk.bf16.vlgmr.msra.gmra.mrb[0].mxu1 %vm418_vm3, %v629_v34  ;;  %2399 = vmatprep.mubr.msk.bf16.mxu0 %vm418_vm3, %v2635_v33  ;;  %v1638_v33 = vrot.slane %v3077_v32, 1  ;;  %v2649_v34 = vld [vmem:[#allocation2 + $0x34] sm:$0xff]   ;;  %v1646_v32 = vrot.slane %v2645_v59, 1 }
  0x63   : > { %2348 = vmatpush3.bf16.msra.mxu1 %v815_v38  ;;  %2339 = vmatprep.mubr.msk.bf16.mxu1 %vm418_vm3, %v631_v39  ;;  %v1645_v39 = vsel %vm624_vm4, %v1642_v36, %v1644_v37 }
  0x64   : > { %2534 = vmatprep.subr.msk.bf16.mxu1 %vm437_vm0, %v2852_v1  ;;  %v1477_v1 = vor.u32 %v1475_v48, %v1473_v42  ;;  %v1639_v20 = vsel %vm624_vm4, %v1636_v27, %v1638_v33 }
  0x66   : > { %v1482_v60 = vsel %vm365_vm2, %v1477_v1, %v1481_v54 }
  0x69   : > { %2400 = vmatmul.mubr.msk.bf16.gmra.mrb[8].mxu0 %vm418_vm3, %v2636_v46 }
  0x6a   : > { %2340 = vmatmul.mubr.msk.bf16.gmra.mrb[4].mxu1 %vm418_vm3, %v633_v50  ;;  %2405 = vmatprep.mubr.msk.bf16.mxu0 %vm418_vm3, %v1474_v52 }
  0x6b   : > { %2343 = vmatprep.mubr.msk.bf16.mxu1 %vm418_vm3, %v635_v47 }
  0x71   : > { %2406 = vmatmul.mubr.msk.bf16.vlgmr.msra.gmra.mrb[0].mxu0 %vm418_vm3, %v1482_v60 }
  0x72   : > { %2344 = vmatmul.mubr.msk.bf16.gmra.mrb[8].mxu1 %vm418_vm3, %v637_v63  ;;  %2418 = vmatpush3.bf16.msra.mxu0 %v1667_v0 }
  0x73   : > { %2409 = vmatprep.mubr.msk.bf16.mxu0 %vm418_vm3, %v1490_v30  ;;  %2349 = vmatprep.mubr.msk.bf16.mxu1 %vm418_vm3, %v2642_v2 }
  0x79   : > { %2410 = vmatmul.mubr.msk.bf16.gmra.mrb[4].mxu0 %vm418_vm3, %v1498_v11 }
  0x7a   : > { %2350 = vmatmul.mubr.msk.bf16.vlgmr.msra.gmra.mrb[0].mxu1 %vm418_vm3, %v2643_v12  ;;  %2413 = vmatprep.mubr.msk.bf16.mxu0 %vm418_vm3, %v1506_v15 }
  0x7b   : > { %2432 = vmatpush3.bf16.msra.mxu1 %v2863_v3  ;;  %2353 = vmatprep.mubr.msk.bf16.mxu1 %vm418_vm3, %v2646_v16  ;;  %v1640_v3 = vrot.slane %v3082_v44, 1  ;;  %v1794_v44 = vstv %s2171_s30  ;;  %s2747_s30 = smov [#allocation3]  }
  0x7c   : > { %v1795_v48 = vadd.s32 1, %v1794_v44  ;;  %vm1802_vm5 = vcmp.ge.s32.totalorder %v1794_v44, 1  ;;  %vm1806_vm6 = vcmp.lt.s32.totalorder %v1794_v44, 17  ;;  %v1796_v60 = vadd.s32 2, %v1794_v44  ;;  %s2654_s5 = sshll.u32 %s2747_s30, 4  ;;  %s2655_s5 = int_to_ptr.vmem [resolvable:$false] %s2654_s5 }
  0x7d   : > { %v1641_v35 = vsel %vm624_vm4, %v1638_v33, %v1640_v3  ;;  %v1643_v38 = vsel %vm624_vm4, %v1640_v3, %v1642_v36  ;;  %vm3165_vm9 = vmand %vm1802_vm5, %vm1806_vm6  ;;  %s2656_s6 = scalar_lea.vmem %s2655_s5, 1536  ;;  %p2657_p5 = scmp.lt.s32.totalorder %s3249_s11, %s2655_s5 }
  0x7e   : > { %vm1803_vm7 = vcmp.ge.s32.totalorder %v1795_v48, 1  ;;  %vm1807_vm8 = vcmp.lt.s32.totalorder %v1795_v48, 17  ;;  %vm1804_vm0 = vcmp.ge.s32.totalorder %v1796_v60, 1  ;;  %vm1808_vm1 = vcmp.lt.s32.totalorder %v1796_v60, 17  ;;  %p2658_p6 = scmp.lt.s32.totalorder %s2656_s6, %s2650_s27 }
  0x7f   : > { %vm3172_vm12 = vmand %vm1803_vm7, %vm1807_vm8 }
  0x80   : > { %vm3200_vm2 = vmand %vm1804_vm0, %vm1808_vm1  ;;  %p2659_p7 = por %p2658_p6, %p2657_p5 }
  0x81   : > { %2414 = vmatmul.mubr.msk.bf16.gmra.mrb[8].mxu0 %vm418_vm3, %v1514_v28 }
  0x82   : > { %2354 = vmatmul.mubr.msk.bf16.gmra.mrb[4].mxu1 %vm418_vm3, %v2647_v29  ;;  %2419 = vmatprep.mubr.msk.bf16.mxu0 %vm418_vm3, %v1637_v10  ;;  %v1797_v29 = vadd.s32 3, %v1794_v44  ;;  %p2660_p9 = pnand %p2659_p7, %p2653_p4 }
  0x83   : > { %2357 = vmatprep.mubr.msk.bf16.mxu1 %vm418_vm3, %v2648_v31 }
  0x84   : > { %vm1805_vm5 = vcmp.ge.s32.totalorder %v1797_v29, 1  ;;  %vm1809_vm6 = vcmp.lt.s32.totalorder %v1797_v29, 17 }
  0x85   : > { %vm3224_vm7 = vmand %vm1805_vm5, %vm1809_vm6 }
  0x89   : > { %2420 = vmatmul.mubr.msk.bf16.vlgmr.msra.gmra.mrb[0].mxu0 %vm418_vm3, %v1639_v20 }
  0x8a   : > { %2358 = vmatmul.mubr.msk.bf16.gmra.mrb[8].mxu1 %vm418_vm3, %v2649_v34  ;;  %2423 = vmatprep.mubr.msk.bf16.mxu0 %vm418_vm3, %v1641_v35 }
  0x8b   : > { %2367 = vmatprep.mubr.msk.bf16.mxu1 %vm418_vm3, %v3041_v22  ;;  %v1647_v22 = vsel %vm624_vm4, %v1644_v37, %v1646_v32 }
  0x91   : > { %2424 = vmatmul.mubr.msk.bf16.gmra.mrb[4].mxu0 %vm418_vm3, %v1643_v38 }
  0x92   : > { %2368 = vmatmul.mubr.msk.bf16.vlgmr.msra.gmra.mrb[4].mxu1 %vm418_vm3, %v3046_v24  ;;  %2427 = vmatprep.mubr.msk.bf16.mxu0 %vm418_vm3, %v1645_v39  ;;  %v1798_v24 = vlaneseq }
  0x93   : > { %2371 = vmatprep.mubr.msk.bf16.mxu1 %vm418_vm3, %v3051_v19 }
  0x94   : > { %v3154_v46 = vshrl.u32 %v1798_v24, 7 }
  0x96   : > { %v3157_v19 = vadd.s32 16, %v3154_v46  ;;  %vm1814_vm11 = vcmp.ge.s32.totalorder %v3154_v46, 1 }
  0x97   : > { %vm1820_vm14 = vmand %vm3172_vm12, %vm1814_vm11 }
  0x98   : > { %vm1831_vm10 = vcmp.lt.s32.totalorder %v3157_v19, 17  ;;  %vm1817_vm15 = vmand %vm3165_vm9, %vm1814_vm11 }
  0x99   : > { %2428 = vmatmul.mubr.msk.bf16.gmra.mrb[8].mxu0 %vm418_vm3, %v1647_v22  ;;  %vm1834_vm13 = vmand %vm3165_vm9, %vm1831_vm10 }
  0x9a   : > { %2372 = vmatmul.mubr.msk.bf16.gmra.mrb[8].mxu1 %vm418_vm3, %v3055_v25  ;;  %v3162_v25 = vld [vmem:[%s3315_s3] ss:$0 sm:$0xff]  ;;  %vm1823_vm3 = vmand %vm3200_vm2, %vm1814_vm11 }
  0x9b   : > { %vm1837_vm4 = vmand %vm3172_vm12, %vm1831_vm10 }
  0x9c   : > { %vm1840_vm8 = vmand %vm3200_vm2, %vm1831_vm10 }
 0x14d   : > { %v2351_v45 = vpop.f32.mrb[0].mxu1 }
 0x14e   : > { %v851_v40 = vpop.f32.mrb[1].mxu1 }
 0x14f   : > { %v2352_v42 = vpop.f32.mrb[2].mxu1 }
 0x150   : > { %v854_v43 = vpop.f32.mrb[3].mxu1 }
 0x15c   : > { %v2421_v49 = vpop.f32.mrb[0].mxu0 }
 0x15d   : > { %v2433_v50 = vadd.f32 %v2421_v49, %v2351_v45  ;;  %v1703_v52 = vpop.f32.mrb[1].mxu0 }
 0x15e   : > { %v2434_v53 = vadd.f32 %v1703_v52, %v851_v40  ;;  %v2422_v61 = vpop.f32.mrb[2].mxu0 }
 0x15f   : > { %v1771_v23 = vadd.f32 %v2433_v50, %v3162_v25  ;;  %v2435_v1 = vadd.f32 %v2422_v61, %v2352_v42  ;;  %v1706_v51 = vpop.f32.mrb[3].mxu0 }
 0x160   : > { %v1769_v55 = vadd.f32 %v2434_v53, %v3162_v25  ;;  %v2436_v56 = vadd.f32 %v1706_v51, %v854_v43 }
 0x161   : > { %v1783_v57 = vmax.f32 %v1771_v23, 0.0  ;;  %v1772_v58 = vadd.f32 %v2435_v1, %v3162_v25 }
 0x162   : > { %v1781_v62 = vmax.f32 %v1769_v55, 0.0  ;;  %v1770_v63 = vadd.f32 %v2436_v56, %v3162_v25 }
 0x163   : > { %v1784_v0 = vmax.f32 %v1772_v58, 0.0  ;;  %v1870_v5 = vsel %vm1834_vm13, %v1783_v57, 0.0 }
 0x164   : > { %v1782_v2 = vmax.f32 %v1770_v63, 0.0  ;;  %v2425_v4 = vpop.f32.mrb[4].mxu0  ;;  %v1868_v59 = vsel %vm1817_vm15, %v1781_v62, 0.0 }
 0x165   : > { %v1871_v30 = vsel %vm1820_vm14, %v1784_v0, 0.0  ;;  %v1719_v41 = vpop.f32.mrb[5].mxu0  ;;  %v2369_v6 = vpop.f32.mrb[4].mxu1 }
 0x166   : > { %v2215_v7 = vpack.c.bf16 %v1871_v30, %v1870_v5  ;;  %v1869_v8 = vsel %vm3165_vm9, %v1782_v2, 0.0  ;;  %v2426_v9 = vpop.f32.mrb[6].mxu0  ;;  %v2437_v11 = vadd.f32 %v2425_v4, %v2369_v6  ;;  %v1081_v12 = vpop.f32.mrb[5].mxu1  ;;  %vm1843_vm9 = vmand %vm3224_vm7, %vm1831_vm10 }
 0x167   : > { %v2210_v13 = vpack.c.bf16 %v1869_v8, %v1868_v59  ;;  %v1722_v14 = vpop.f32.mrb[7].mxu0  ;;  %v2438_v15 = vadd.f32 %v1719_v41, %v1081_v12  ;;  %v2370_v16 = vpop.f32.mrb[6].mxu1 }
 0x168   : > { %2237 = vst [vmem:[%s3195_s9 + $0x8] sm:$0xff] %v2215_v7   ;;  %v1775_v17 = vadd.f32 %v2437_v11, %v3162_v25  ;;  %v2439_v21 = vadd.f32 %v2426_v9, %v2370_v16  ;;  %v1084_v26 = vpop.f32.mrb[7].mxu1 }
 0x169   : > { %2211 = vst [vmem:[%s3195_s9] sm:$0xff] %v2210_v13   ;;  %v1773_v27 = vadd.f32 %v2438_v15, %v3162_v25  ;;  %v2440_v28 = vadd.f32 %v1722_v14, %v1084_v26 }
 0x16a   : > { %v1787_v10 = vmax.f32 %v1775_v17, 0.0  ;;  %v1776_v31 = vadd.f32 %v2439_v21, %v3162_v25 }
 0x16b   : > { %v1785_v33 = vmax.f32 %v1773_v27, 0.0  ;;  %v1774_v3 = vadd.f32 %v2440_v28, %v3162_v25 }
 0x16c   : > { %v1788_v20 = vmax.f32 %v1776_v31, 0.0  ;;  %v2429_v34 = vpop.f32.mrb[8].mxu0  ;;  %v1874_v38 = vsel %vm1823_vm3, %v1787_v10, 0.0 }
 0x16d   : > { %v1786_v35 = vmax.f32 %v1774_v3, 0.0  ;;  %v1735_v36 = vpop.f32.mrb[9].mxu0  ;;  %v2373_v37 = vpop.f32.mrb[8].mxu1  ;;  %v1872_v40 = vsel %vm3172_vm12, %v1785_v33, 0.0  ;;  %vm1826_vm12 = vmand %vm3224_vm7, %vm1814_vm11 }
 0x16e   : > { %v1875_v39 = vsel %vm3200_vm2, %v1788_v20, 0.0  ;;  %v2430_v32 = vpop.f32.mrb[10].mxu0  ;;  %v2441_v22 = vadd.f32 %v2429_v34, %v2373_v37  ;;  %v1097_v45 = vpop.f32.mrb[9].mxu1 }
 0x16f   : > { %v2225_v42 = vpack.c.bf16 %v1875_v39, %v1874_v38  ;;  %v1873_v43 = vsel %vm1837_vm4, %v1786_v35, 0.0  ;;  %v1738_v24 = vpop.f32.mrb[11].mxu0  ;;  %v2442_v44 = vadd.f32 %v1735_v36, %v1097_v45  ;;  %v2374_v48 = vpop.f32.mrb[10].mxu1 }
 0x170   : > { %v2220_v49 = vpack.c.bf16 %v1873_v43, %v1872_v40  ;;  %v1779_v50 = vadd.f32 %v2441_v22, %v3162_v25  ;;  %v2443_v47 = vadd.f32 %v2430_v32, %v2374_v48  ;;  %v1100_v53 = vpop.f32.mrb[11].mxu1 }
 0x171   : > { %2239 = vst [vmem:[%s3195_s9 + $0x18] sm:$0xff] %v2225_v42   ;;  %v1777_v61 = vadd.f32 %v2442_v44, %v3162_v25  ;;  %v2444_v23 = vadd.f32 %v1738_v24, %v1100_v53 }
 0x172   : > { %2238 = vst [vmem:[%s3195_s9 + $0x10] sm:$0xff] %v2220_v49   ;;  %v1791_v1 = vmax.f32 %v1779_v50, 0.0  ;;  %v1780_v54 = vadd.f32 %v2443_v47, %v3162_v25 }
 0x173   : > { %v1789_v51 = vmax.f32 %v1777_v61, 0.0  ;;  %v1778_v55 = vadd.f32 %v2444_v23, %v3162_v25 }
 0x174   : > { %v1792_v56 = vmax.f32 %v1780_v54, 0.0  ;;  %v1878_v19 = vsel %vm3224_vm7, %v1791_v1, 0.0 }
 0x175   : > { %v1790_v57 = vmax.f32 %v1778_v55, 0.0  ;;  %v1876_v60 = vsel %vm1840_vm8, %v1789_v51, 0.0 }
 0x176   : > { %v1879_v58 = vsel %vm1843_vm9, %v1792_v56, 0.0 }
 0x177   : > { %v2235_v62 = vpack.c.bf16 %v1879_v58, %v1878_v19  ;;  %v1877_v63 = vsel %vm1826_vm12, %v1790_v57, 0.0 }
 0x178   : > { %v2230_v46 = vpack.c.bf16 %v1877_v63, %v1876_v60 }
 0x179   : > { %2241 = vst [vmem:[%s3195_s9 + $0x28] sm:$0xff] %v2235_v62  }
 0x17a   : > { %2240 = vst [vmem:[%s3195_s9 + $0x20] sm:$0xff] %v2230_v46  }
 0x17b   : > { %2663 = shalt.err (!%p2660_p9)
}
 0x17c   : > { %s2664_s18 = scalar_lea.hbm %s3254_s23, 768  ;;  %s2668_s10 = scalar_lea.hbm %s3316_s4, 7680 }
 0x17d   : > { %p2665_p10 = scmp.ne.s32.totalorder %s3254_s23, %s2664_s18  ;;  %p2669_p13 = scmp.lt.u32.totalorder %s3254_s23, %s3316_s4 }
 0x17e   : > { %p2670_p0 = scmp.lt.u32.totalorder %s2668_s10, %s2664_s18  ;;  %p2672_p2 = scmp.lt.u32.totalorder %s2664_s18, %s3254_s23 }
 0x17f   : > { %p2666_p11 = pnand %p2665_p10, %p2826_p3 }
 0x180   : > { %p2671_p1 = por %p2670_p0, %p2669_p13 }
 0x181   : > { %p2667_p12 = pneg %p2666_p11 }
 0x182   : > { %p2673_p4 = por %p2672_p2, %p2671_p1 }
 0x184   : > { %p2674_p5 = pnand %p2673_p4, %p2667_p12 }
 0x186   : > { %2677 = shalt.err (!%p2674_p5)
}
 0x187   : > { %s2748_s13 = smov 64   ;;  %s2749_s14 = smov 4  }
 0x188   : > { %2543 = dma.vmem_to_hbm [thread:$0]  (%p2826_p3), %s3249_s11, 768, %s3254_s23, %s3260_s24, %s2748_s13, %s2748_s13, %s2749_s14  }
 0x189 PF: > { %p2549_p6 = scmp.ge.s32.totalorder %s2744_s22, 2  ;;  %s1976_s27 = sand.u32 1, %s2716_s15  }
 0x18a   : > { %s1977_s30 = scalar_lea.sflag [#allocation4], %s1976_s27 }
 0x18b   : > { %p2546_p7 = pnand %p2549_p6, %p2835_p8 }
 0x18d   : > { %2711 = dma.done.wait (!%p2546_p7), %s1977_s30, 768  }
 0x18e   : > { %2713 = vsyncadd (!%p2546_p7), %s1977_s30, 4294966528  ;;  %s17_s22 = sadd.s32 1, %s2744_s22   ;;  %s3327_s15 = smov %s2720_s16 }
 0x18f   : > { %p14_p9 = scmp.ge.s32.totalorder %s17_s22, 12   ;;  %s3328_s16 = smov %s2724_s17 }
 0x190   : > { %s3329_s17 = smov %s2844_s7  ;;  %s3330_s18 = smov %s2736_s20 }
 0x191   : > { %s3331_s19 = smov %s2740_s21  ;;  %s3332_s20 = smov %s3335_s25 }
 0x192   : > { %s3333_s21 = smov %s3339_s26  ;;  %16 = sbr.rel (!%p14_p9) target bundleno = 5 (0x5), region = 82 }
 0x199   :  { %1982 = vsyncpa [#allocation4], 1 }
 0x19a   :  { %1984 = vsyncpa [#allocation4 + $0x1], 1 }

</bundles_post_ra>
